<compile_context>
chip_gen: v7x
topology: tpu7x:2x2x1
jax: 0.10.0
libtpu: 0.0.40
codegen_flags: <defaults>
</compile_context>

<pallas_src>
import functools

import jax
import jax.numpy as jnp
import numpy as np
from jax.experimental import pallas as pl
from jax.experimental.pallas import tpu as pltpu

_VMEM_LIMIT = 32 * 1024 * 1024   # safe scoped-VMEM budget on v5e / v6e / v7x


# ---------------------------------------------------------------------------
# Fused input projection:  gx = x @ W + b  (one matmul per layer, both dirs)
# ---------------------------------------------------------------------------
def _matmul_bias_kernel(x_ref, w_ref, b_ref, o_ref):
    o_ref[...] = (
        jnp.dot(x_ref[...], w_ref[...], preferred_element_type=jnp.float32)
        + b_ref[...]
    )


def matmul_bias(x, w, b, *, tm=256, tn=512):
    """x (M,K) @ w (K,N) + b (N,), tiled over (M, N); K kept resident."""
    M, K = x.shape
    N = w.shape[1]
    # TODO(synk): ragged M/N (remainder tiles) and K-tiling with an f32 VMEM
    # accumulator are needed at production sizes; demo shapes divide evenly.
    if M < tm or M % tm:
        tm = M
    if N < tn or N % tn:
        tn = N
    return pl.pallas_call(
        _matmul_bias_kernel,
        out_shape=jax.ShapeDtypeStruct((M, N), jnp.float32),
        grid=(M // tm, N // tn),
        in_specs=[
            pl.BlockSpec((tm, K), lambda i, j: (i, 0)),
            pl.BlockSpec((K, tn), lambda i, j: (0, j)),
            pl.BlockSpec((1, tn), lambda i, j: (0, j)),
        ],
        out_specs=pl.BlockSpec((tm, tn), lambda i, j: (i, j)),
        compiler_params=pltpu.CompilerParams(
            dimension_semantics=("parallel", "parallel"),
            vmem_limit_bytes=_VMEM_LIMIT),
    )(x, w, b.reshape(1, N))


# ---------------------------------------------------------------------------
# Single-invocation bidirectional LSTM layer recurrence
# ---------------------------------------------------------------------------
def _bilstm_layer_kernel(gx_ref, whh_ref, h0_ref, c0_ref,
                         out_ref, hn_ref, cn_ref, *, hidden):
    """Both directions of one LSTM layer, full sequence, one kernel call.

    gx_ref : (T, B, 8H) time-major x-side gates for both directions, columns
             packed [i_f,i_r, f_f,f_r, o_f,o_r, g_f,g_r] (bias included).
    whh_ref: (2H, 8H) block-diagonal recurrent weights (rows = [h_f | h_r]).
    h0/c0  : (B, 2H) initial state  [fwd | rev].
    out_ref: (T, B, 2H) hidden states per time step, [fwd | rev].
    hn/cn  : (B, 2H) final state    [fwd | rev], written once at the end.
    """
    T, B, _ = gx_ref.shape
    H = hidden
    H2, H4, H6 = 2 * H, 4 * H, 6 * H

    whh = whh_ref[...]                                   # loop-invariant, vregs
    col = jax.lax.broadcasted_iota(jnp.int32, (B, 8 * H), 1)
    fwd_cols = ((col // H) % 2) == 0                     # fwd gate column blocks

    def step(s, carry):
        h, c = carry                                                 # (B, 2H)
        hh = jnp.dot(h, whh, preferred_element_type=jnp.float32)     # (B, 8H)
        # Forward direction consumes time s, reverse consumes time T-1-s.
        gates = jnp.where(fwd_cols, gx_ref[s], gx_ref[T - 1 - s]) + hh
        sig = jax.nn.sigmoid(gates[:, :H6])              # one contiguous slab
        g = jnp.tanh(gates[:, H6:])
        i_g, f_g, o_g = sig[:, :H2], sig[:, H2:H4], sig[:, H4:H6]
        c_new = f_g * c + i_g * g
        h_new = o_g * jnp.tanh(c_new)
        out_ref[s, :, pl.ds(0, H)] = h_new[:, :H]            # fwd @ time s
        out_ref[T - 1 - s, :, pl.ds(H, H)] = h_new[:, H:]    # rev @ time T-1-s
        return h_new, c_new

    h_fin, c_fin = jax.lax.fori_loop(
        0, T, step, (h0_ref[...], c0_ref[...]), unroll=(T <= 16))
    hn_ref[...] = h_fin
    cn_ref[...] = c_fin


def bilstm_layer(gx, whh, h0, c0, *, hidden):
    """gx (T,B,8H), whh (2H,8H), h0/c0 (B,2H) -> (out (T,B,2H), hn, cn)."""
    T, B, G = gx.shape
    H = hidden
    # TODO(synk): at production T the gx slab should be chunked over time (and
    # the direction axis split onto v7x's two TensorCores); the full slab fits
    # VMEM comfortably at these sizes.
    return pl.pallas_call(
        functools.partial(_bilstm_layer_kernel, hidden=H),
        out_shape=(
            jax.ShapeDtypeStruct((T, B, 2 * H), jnp.float32),
            jax.ShapeDtypeStruct((B, 2 * H), jnp.float32),
            jax.ShapeDtypeStruct((B, 2 * H), jnp.float32),
        ),
        grid=(1,),
        in_specs=[
            pl.BlockSpec((T, B, G), lambda i: (0, 0, 0)),
            pl.BlockSpec((2 * H, G), lambda i: (0, 0)),
            pl.BlockSpec((B, 2 * H), lambda i: (0, 0)),
            pl.BlockSpec((B, 2 * H), lambda i: (0, 0)),
        ],
        out_specs=(
            pl.BlockSpec((T, B, 2 * H), lambda i: (0, 0, 0)),
            pl.BlockSpec((B, 2 * H), lambda i: (0, 0)),
            pl.BlockSpec((B, 2 * H), lambda i: (0, 0)),
        ),
        compiler_params=pltpu.CompilerParams(
            dimension_semantics=("arbitrary",),
            vmem_limit_bytes=_VMEM_LIMIT),
    )(gx, whh, h0, c0)


# ---------------------------------------------------------------------------
# Encoder forward (glue in plain JAX, hot paths in Pallas)
# ---------------------------------------------------------------------------
def encoder_forward(params, x_ids, hidden):
    """Mirrors Encoder.forward(x, hidden)."""
    h0_all, c0_all = hidden                        # (L*2, B, H) each
    H = params["num_hidden"]
    L = params["layers"]
    B, T = x_ids.shape

    # Time-major embedding lookup: (T, B, E).  Keeping the whole pipeline
    # time-major removes the per-layer transpose of the large gx intermediate.
    emb_tm = jnp.take(params["embedding"], x_ids.T, axis=0)
    # TODO(synk): nn.Dropout and the LSTM inter-layer dropout are stochastic;
    # implemented as identity (eval-mode semantics).
    layer_in = emb_tm                               # (T, B, Din)

    hn = cn = None
    for l in range(L):
        p = params["bilstm"][l]
        Din = layer_in.shape[-1]
        gx = matmul_bias(layer_in.reshape(T * B, Din),
                         p["w_ih_comb"], p["b_comb"])         # (T*B, 8H)
        gx = gx.reshape(T, B, 8 * H)                          # time-major
        h0 = jnp.concatenate([h0_all[2 * l], h0_all[2 * l + 1]], axis=1)
        c0 = jnp.concatenate([c0_all[2 * l], c0_all[2 * l + 1]], axis=1)
        layer_in, hn, cn = bilstm_layer(gx, p["w_hh_comb"], h0, c0, hidden=H)

    output = layer_in.transpose(1, 0, 2)            # (B, T, 2H) batch-first
    # PyTorch: h = cat(h_n[-1], h_n[-2]) = [last-layer reverse | forward].
    h = jnp.concatenate([hn[:, H:], hn[:, :H]], axis=1)
    c = jnp.concatenate([cn[:, H:], cn[:, :H]], axis=1)
    return output, (h[None], c[None])


# ---------------------------------------------------------------------------
# Pure-JAX reference (for correctness check) — uses raw per-direction weights
# ---------------------------------------------------------------------------
def _ref_lstm_dir(x_seq, w_ih_t, w_hh_t, b, h0, c0, reverse):
    H = h0.shape[-1]
    xs = x_seq[::-1] if reverse else x_seq

    def step(carry, xt):
        h, c = carry
        gates = xt @ w_ih_t + b + h @ w_hh_t
        i = jax.nn.sigmoid(gates[:, :H])
        f = jax.nn.sigmoid(gates[:, H:2 * H])
        g = jnp.tanh(gates[:, 2 * H:3 * H])
        o = jax.nn.sigmoid(gates[:, 3 * H:])
        c = f * c + i * g
        h = o * jnp.tanh(c)
        return (h, c), h

    (hN, cN), outs = jax.lax.scan(step, (h0, c0), xs)
    if reverse:
        outs = outs[::-1]
    return outs, hN, cN


def encoder_forward_ref(params, x_ids, hidden):
    h0_all, c0_all = hidden
    emb = jnp.take(params["embedding"], x_ids, axis=0)
    layer_in = emb
    h_n, c_n = [], []
    for l in range(params["layers"]):
        outs = []
        for d in range(2):
            p = params["lstm"][(l, d)]
            x_seq = layer_in.transpose(1, 0, 2)              # (T, B, in)
            out, hN, cN = _ref_lstm_dir(
                x_seq, p["w_ih_t"], p["w_hh_t"], p["b"],
                h0_all[2 * l + d], c0_all[2 * l + d], reverse=(d == 1))
            outs.append(out.transpose(1, 0, 2))
            h_n.append(hN)
            c_n.append(cN)
        layer_in = jnp.concatenate(outs, axis=-1)
    h_n = jnp.stack(h_n)
    c_n = jnp.stack(c_n)
    h = jnp.concatenate([h_n[-1], h_n[-2]], axis=1)
    c = jnp.concatenate([c_n[-1], c_n[-2]], axis=1)
    return layer_in, (h[None], c[None])


# ---------------------------------------------------------------------------
# Deterministic parameter construction + fused-layer packing
# ---------------------------------------------------------------------------
def _pack_bidir(w_ih_f, w_hh_f, b_f, w_ih_r, w_hh_r, b_r, H):
    """Pack both directions of one layer for the fused kernel.

    PyTorch layout: w_ih (4H, in), w_hh (4H, H), gate rows ordered [i, f, g, o].
    Packed gate-column order: [i_f,i_r, f_f,f_r, o_f,o_r, g_f,g_r].
    """
    wif, wir = w_ih_f.T, w_ih_r.T            # (in, 4H)
    whf, whr = w_hh_f.T, w_hh_r.T            # (H, 4H)
    zH = jnp.zeros((H, H), jnp.float32)
    ih_cols, hh_cols, b_cols = [], [], []
    for gate in (0, 1, 3, 2):                # i, f, o, g
        sl = slice(gate * H, (gate + 1) * H)
        ih_cols += [wif[:, sl], wir[:, sl]]
        hh_cols += [jnp.concatenate([whf[:, sl], zH], axis=0),
                    jnp.concatenate([zH, whr[:, sl]], axis=0)]
        b_cols += [b_f[sl], b_r[sl]]
    return (jnp.concatenate(ih_cols, axis=1),    # (in, 8H)
            jnp.concatenate(hh_cols, axis=1),    # (2H, 8H) block-diagonal
            jnp.concatenate(b_cols, axis=0))     # (8H,)


def init_params(key, *, vocab, embed_dim, num_hidden, layers):
    keys = jax.random.split(key, 1 + layers * 2 * 4)
    k = 1.0 / np.sqrt(num_hidden)
    params = {
        "layers": layers,
        "num_hidden": num_hidden,
        "embedding": jax.random.normal(keys[0], (vocab, embed_dim),
                                       jnp.float32) * 0.1,
        "lstm": {},       # raw per-direction weights (reference path)
        "bilstm": [],     # packed fused weights (Pallas kernel path)
    }
    idx = 1
    for l in range(layers):
        in_size = embed_dim if l == 0 else 2 * num_hidden
        raw = []
        for d in range(2):
            w_ih = jax.random.uniform(keys[idx + 0], (4 * num_hidden, in_size),
                                      jnp.float32, -k, k)
            w_hh = jax.random.uniform(keys[idx + 1], (4 * num_hidden, num_hidden),
                                      jnp.float32, -k, k)
            b_ih = jax.random.uniform(keys[idx + 2], (4 * num_hidden,),
                                      jnp.float32, -k, k)
            b_hh = jax.random.uniform(keys[idx + 3], (4 * num_hidden,),
                                      jnp.float32, -k, k)
            b = b_ih + b_hh
            params["lstm"][(l, d)] = {"w_ih_t": w_ih.T,   # (in, 4H)
                                      "w_hh_t": w_hh.T,   # (H, 4H)
                                      "b": b}             # (4H,)
            raw.append((w_ih, w_hh, b))
            idx += 4
        (wif, whf, bf), (wir, whr, br) = raw
        w_ih_c, w_hh_c, b_c = _pack_bidir(wif, whf, bf, wir, whr, br, num_hidden)
        params["bilstm"].append(
            {"w_ih_comb": w_ih_c, "w_hh_comb": w_hh_c, "b_comb": b_c})
    return params


# ---------------------------------------------------------------------------
if __name__ == "__main__":
    # Small, module-consistent sizes.
    B, T = 2, 8
    vocab, embed_dim, num_hidden, layers = 20, 32, 32, 2

    key = jax.random.PRNGKey(0)
    k_param, k_ids = jax.random.split(key)
    params = init_params(k_param, vocab=vocab, embed_dim=embed_dim,
                         num_hidden=num_hidden, layers=layers)

    x_ids = jax.random.randint(k_ids, (B, T), 0, vocab, dtype=jnp.int32)
    # init_hidden(batch_size): zeros of shape (layers*2, B, H)
    hidden = (jnp.zeros((layers * 2, B, num_hidden), jnp.float32),
              jnp.zeros((layers * 2, B, num_hidden), jnp.float32))

    out, (h, c) = encoder_forward(params, x_ids, hidden)
    jax.block_until_ready((out, h, c))

    out_r, (h_r, c_r) = encoder_forward_ref(params, x_ids, hidden)
    np.testing.assert_allclose(np.asarray(out), np.asarray(out_r),
                               atol=1e-5, rtol=1e-5)
    np.testing.assert_allclose(np.asarray(h), np.asarray(h_r),
                               atol=1e-5, rtol=1e-5)
    np.testing.assert_allclose(np.asarray(c), np.asarray(c_r),
                               atol=1e-5, rtol=1e-5)

    assert out.shape == (B, T, 2 * num_hidden)
    assert h.shape == (1, B, 2 * num_hidden) and c.shape == (1, B, 2 * num_hidden)
    print("KERNEL_OK")
</pallas_src>

<mosaic_0001>
module attributes {stable_mosaic.version = 11 : i64} {
  func.func @_matmul_bias_kernel(%arg0: i32, %arg1: i32, %arg2: memref<16x32xf32, #tpu.memory_space<vmem>>, %arg3: memref<32x256xf32, #tpu.memory_space<vmem>>, %arg4: memref<1x256xf32, #tpu.memory_space<vmem>>, %arg5: memref<16x256xf32, #tpu.memory_space<vmem>>) attributes {dimension_semantics = [#tpu.dimension_semantics<parallel>, #tpu.dimension_semantics<parallel>], iteration_bounds = array<i64: 1, 1>, scalar_prefetch = 0 : i64, scratch_operands = 0 : i64, tpu.core_type = #tpu.core_type<tc>, window_params = [{transform_indices = @transform_0, window_bounds = array<i64: 16, 32>}, {transform_indices = @transform_1, window_bounds = array<i64: 32, 256>}, {transform_indices = @transform_2, window_bounds = array<i64: 1, 256>}, {transform_indices = @transform_3, window_bounds = array<i64: 16, 256>}]} {
    %c0 = arith.constant 0 : index
    %c0_0 = arith.constant 0 : index
    %0 = vector.load %arg2[%c0, %c0_0] : memref<16x32xf32, #tpu.memory_space<vmem>>, vector<16x32xf32>
    %c0_1 = arith.constant 0 : index
    %c0_2 = arith.constant 0 : index
    %1 = vector.load %arg3[%c0_1, %c0_2] : memref<32x256xf32, #tpu.memory_space<vmem>>, vector<32x256xf32>
    %cst = arith.constant dense<0.000000e+00> : vector<16x256xf32>
    %2 = tpu.matmul %0, %1, %cst {dimension_numbers = #tpu.dot_dimension_numbers<[1], [0], [0], [1], [0, 0, 1, 1], [], []>} : vector<16x32xf32>, vector<32x256xf32>, vector<16x256xf32> -> vector<16x256xf32>
    %c0_3 = arith.constant 0 : index
    %c0_4 = arith.constant 0 : index
    %3 = vector.load %arg4[%c0_3, %c0_4] : memref<1x256xf32, #tpu.memory_space<vmem>>, vector<1x256xf32>
    %4 = vector.broadcast %3 : vector<1x256xf32> to vector<16x256xf32>
    %5 = arith.addf %2, %4 : vector<16x256xf32>
    %c0_5 = arith.constant 0 : index
    %c0_6 = arith.constant 0 : index
    %6 = vector.load %arg5[%c0_5, %c0_6] : memref<16x256xf32, #tpu.memory_space<vmem>>, vector<16x256xf32>
    tpu.vector_store %arg5[%c0_5, %c0_6], %5 {strides = array<i32>} : memref<16x256xf32, #tpu.memory_space<vmem>>, vector<16x256xf32>,
    return
  }
  func.func @transform_0(%arg0: i32, %arg1: i32) -> (i32, i32) {
    %c0_i32 = arith.constant 0 : i32
    %c0_i32_0 = arith.constant 0 : i32
    return %arg0, %c0_i32 : i32, i32
  }
  func.func @transform_1(%arg0: i32, %arg1: i32) -> (i32, i32) {
    %c0_i32 = arith.constant 0 : i32
    %c0_i32_0 = arith.constant 0 : i32
    return %c0_i32, %arg1 : i32, i32
  }
  func.func @transform_2(%arg0: i32, %arg1: i32) -> (i32, i32) {
    %c0_i32 = arith.constant 0 : i32
    %c0_i32_0 = arith.constant 0 : i32
    return %c0_i32, %arg1 : i32, i32
  }
  func.func @transform_3(%arg0: i32, %arg1: i32) -> (i32, i32) {
    %c0_i32 = arith.constant 0 : i32
    return %arg0, %arg1 : i32, i32
  }
}

</mosaic_0001>

<bundles_post_ra>
// kernel: tpu_custom_call.1
= control target key start
LH: loop header
LB: loop body
LE: loop exit
PB: predicated region body
PF: predicated region fallthrough
CT: control target
= control target key end

     0   :  { %8 = vsyncpa [#allocation3], 0  ;;  %s338_s0 = inlined_call_operand.hbm [shape: f32[16,32], index: 0, kind: input, shape index: {}]   ;;  %s339_s1 = inlined_call_operand.hbm [shape: f32[32,256], index: 1, kind: input, shape index: {}]   ;;  %s340_s2 = inlined_call_operand.vmem [shape: f32[1,256], index: 2, kind: input, shape index: {}]   ;;  %s341_s3 = inlined_call_operand.hbm [shape: f32[16,256], index: 3, kind: output, shape index: {}]  }
   0x1   :  { %9 = vsyncpa [#allocation6], 0 }
   0x2   :  { %10 = vsyncpa [#allocation4], 0  ;;  %s265_s12 = smov [#allocation2]   ;;  %s193_s16 = scalar_lea.hbm %s338_s0, 256 }
   0x3   :  { %s16_s13 = sshll.u32 %s265_s12, 4  ;;  %p194_p0 = scmp.ne.s32.totalorder %s338_s0, %s193_s16  ;;  %s17_s13 = int_to_ptr.vmem [resolvable:$true] %s16_s13 }
   0x4   :  { %p197_p1 = scmp.lt.u32.totalorder %s193_s16, %s338_s0 }
   0x6   :  { %p199_p2 = pnand %p197_p1, %p194_p0 }
   0x8   :  { %202 = shalt.err (!%p199_p2)
}
   0x9   :  { %s203_s21 = scalar_lea.vmem %s17_s13, 256  ;;  %p208_p4 = scmp.lt.s32.totalorder %s17_s13, %s17_s13 }
   0xa   :  { %p204_p3 = scmp.ne.s32.totalorder %s17_s13, %s203_s21  ;;  %p209_p5 = scmp.lt.s32.totalorder %s203_s21, %s203_s21 }
   0xc   :  { %p210_p6 = por %p209_p5, %p208_p4 }
   0xe   :  { %p211_p7 = pnand %p210_p6, %p204_p3 }
  0x10   :  { %214 = shalt.err (!%p211_p7)
}
  0x11   :  { %s266_s22 = smov 128   ;;  %s267_s23 = smov 8  }
  0x12   :  { %22 = dma.hbm_to_vmem [thread:$0]  %s338_s0, 256, %s17_s13, [#allocation3], %s266_s22, %s266_s22, %s267_s23  }
  0x13   :  { %s268_s26 = smov [#allocation5]   ;;  %s215_s30 = scalar_lea.hbm %s339_s1, 1024 }
  0x14   :  { %s28_s27 = sshll.u32 %s268_s26, 4  ;;  %p216_p8 = scmp.ne.s32.totalorder %s339_s1, %s215_s30  ;;  %s29_s27 = int_to_ptr.vmem [resolvable:$true] %s28_s27 }
  0x15   :  { %p219_p9 = scmp.lt.u32.totalorder %s215_s30, %s339_s1 }
  0x17   :  { %p221_p10 = pnand %p219_p9, %p216_p8 }
  0x19   :  { %224 = shalt.err (!%p221_p10)
}
  0x1a   :  { %s225_s8 = scalar_lea.vmem %s29_s27, 1024  ;;  %p230_p12 = scmp.lt.s32.totalorder %s29_s27, %s29_s27 }
  0x1b   :  { %p226_p11 = scmp.ne.s32.totalorder %s29_s27, %s225_s8  ;;  %p231_p13 = scmp.lt.s32.totalorder %s225_s8, %s225_s8 }
  0x1d   :  { %p232_p0 = por %p231_p13, %p230_p12 }
  0x1f   :  { %p233_p1 = pnand %p232_p0, %p226_p11 }
  0x21   :  { %236 = shalt.err (!%p233_p1)
}
  0x22   :  { %s269_s0 = smov 256   ;;  %s270_s9 = smov 16  }
  0x23   :  { %34 = dma.hbm_to_vmem [thread:$0]  %s339_s1, 1024, %s29_s27, [#allocation6], %s269_s0, %s269_s0, %s270_s9  }
  0x24   :  { %259 = dma.done.wait [#allocation3], 256  }
  0x25   :  { %260 = vsyncadd [#allocation3], 4294967040 }
  0x26   :  { %261 = dma.done.wait [#allocation6], 1024  }
  0x27   :  { %262 = vsyncadd [#allocation6], 4294966272  ;;  %v271_v0 = vmov 0.0   ;;  %v46_v1 = vld [vmem:[#allocation5 + $0x8] sm:$0xff]  ;;  %v48_v2 = vld [vmem:[#allocation5 + $0x18] sm:$0xff]  ;;  %vm65_vm0 = vcmask 261120   ;;  %v55_v15 = vlaneseq }
  0x28   :  { %136 = vmatprep.mubr.f32.mxu0 %v271_v0  ;;  %142 = vmatprep.mubr.f32.mxu1 %v271_v0  ;;  %v45_v3 = vld [vmem:[#allocation5] sm:$0xff]  ;;  %v173_v4 = vpack.c.bf16 %v48_v2, %v46_v1  ;;  %v47_v5 = vld [vmem:[#allocation5 + $0x10] sm:$0xff]  ;;  %v50_v6 = vld [vmem:[#allocation5 + $0x28] sm:$0xff]  ;;  %s272_s13 = smov [#allocation7]  }
  0x29   :  { %v52_v7 = vld [vmem:[#allocation5 + $0x38] sm:$0xff]  ;;  %v175_v8 = vpack.c.bf16 %v47_v5, %v45_v3  ;;  %v49_v10 = vld [vmem:[#allocation5 + $0x20] sm:$0xff]  ;;  %v51_v11 = vld [vmem:[#allocation5 + $0x30] sm:$0xff]  ;;  %v56_v16 = vshrl.u32 %v55_v15, 7  ;;  %s158_s14 = sshll.u32 %s272_s13, 4  ;;  %s159_s14 = int_to_ptr.vmem [resolvable:$true] %s158_s14 }
  0x2a   :  { %v177_v9 = vpack.c.bf16 %v52_v7, %v50_v6  ;;  %174 = vmatprep.subr.bf16.mxu0 %v173_v4  ;;  %181 = vmatprep.subr.bf16.mxu1 %v173_v4  ;;  %v179_v12 = vpack.c.bf16 %v51_v11, %v49_v10  ;;  %v43_v13 = vld [vmem:[#allocation2] sm:$0xff]  ;;  %v44_v14 = vld [vmem:[#allocation2 + $0x8] sm:$0xff]  ;;  %s237_s15 = scalar_lea.vmem %s159_s14, 512  ;;  %p242_p3 = scmp.lt.s32.totalorder %s159_s14, %s159_s14 }
  0x2b   :  { %176 = vmatpush1.bf16.msra.mxu0 %v175_v8  ;;  %183 = vmatpush1.bf16.msra.mxu1 %v175_v8  ;;  %v57_v17 = vsub.s32 0, %v56_v16  ;;  %v53_v18 = vld [vmem:[%s340_s2] sm:$0x3]  ;;  %v61_v19 = vsub.s32 1, %v56_v16  ;;  %p238_p2 = scmp.ne.s32.totalorder %s159_s14, %s237_s15  ;;  %p243_p4 = scmp.lt.s32.totalorder %s237_s15, %s237_s15 }
  0x2c   :  { %178 = vmatprep.subr.bf16.mxu0 %v177_v9  ;;  %182 = vmatprep.subr.bf16.mxu1 %v177_v9 }
  0x2d   :  { %v58_v20 = vrot.slane %v53_v18, %v57_v17  ;;  %v62_v21 = vrot.slane %v53_v18, %v61_v19  ;;  %p244_p5 = por %p243_p4, %p242_p3 }
  0x2f   :  { %180 = vmatpush1.bf16.msra.mxu0 %v179_v12  ;;  %184 = vmatpush1.bf16.msra.mxu1 %v179_v12  ;;  %p245_p6 = pnand %p244_p5, %p238_p2 }
  0x32   :  { %171 = vmatmul.mubr.msk.f32.vlgmr.msra.gmra.mrb[0].mxu0 %vm65_vm0, %v43_v13  ;;  %172 = vmatmul.mubr.msk.f32.vlgmr.msra.gmra.mrb[0].mxu1 %vm65_vm0, %v44_v14 }
 0x105   :  { %v138_v22 = vpop.f32.mrb[0].mxu0  ;;  %v144_v23 = vpop.f32.mrb[0].mxu1 }
 0x106   :  { %v139_v24 = vadd.f32 %v138_v22, %v58_v20  ;;  %v145_v25 = vadd.f32 %v144_v23, %v58_v20  ;;  %v140_v26 = vpop.f32.mrb[1].mxu0  ;;  %v146_v27 = vpop.f32.mrb[1].mxu1 }
 0x107   :  { %v141_v28 = vadd.f32 %v140_v26, %v62_v21  ;;  %v147_v29 = vadd.f32 %v146_v27, %v62_v21 }
 0x108   :  { %149 = vst [vmem:[#allocation7] sm:$0xff] %v139_v24  ;;  %151 = vst [vmem:[#allocation7 + $0x10] sm:$0xff] %v145_v25 }
 0x109   :  { %150 = vst [vmem:[#allocation7 + $0x8] sm:$0xff] %v141_v28  ;;  %152 = vst [vmem:[#allocation7 + $0x18] sm:$0xff] %v147_v29 }
 0x10a   :  { %248 = shalt.err (!%p245_p6)
}
 0x10b   :  { %s249_s17 = scalar_lea.hbm %s341_s3, 512 }
 0x10c   :  { %p250_p7 = scmp.ne.s32.totalorder %s341_s3, %s249_s17  ;;  %p253_p8 = scmp.lt.u32.totalorder %s249_s17, %s341_s3 }
 0x10e   :  { %p255_p9 = pnand %p253_p8, %p250_p7 }
 0x110   :  { %258 = shalt.err (!%p255_p9)
}
 0x111   :  { %164 = dma.vmem_to_hbm [thread:$0]  %s159_s14, 512, %s341_s3, [#allocation4], %s269_s0, %s269_s0, %s270_s9  }
 0x112   :  { %263 = dma.done.wait [#allocation4], 512  }
 0x113   :  { %264 = vsyncadd [#allocation4], 4294966784 }
 0x114   :  { %168 = vsyncpa [#allocation3], 1 }
 0x115   :  { %169 = vsyncpa [#allocation6], 1 }
 0x116   :  { %170 = vsyncpa [#allocation4], 1 }

</bundles_post_ra>
